<compile_context>
chip_gen: v5e
topology: v5e:2x2
jax: 0.10.0
libtpu: 0.0.40
codegen_flags: <defaults>
</compile_context>

<pallas_src>
import jax
import jax.numpy as jnp
from jax.experimental import pallas as pl
from jax.experimental.pallas import tpu as pltpu

_LANES = 128


# ---------------------------------------------------------------------------
# Kernel
# ---------------------------------------------------------------------------

def _sigmoid_kernel(x_ref, o_ref):
    """Numerically stable sigmoid on one (bm, 128) tile."""
    x = x_ref[...].astype(jnp.float32)
    z = jnp.exp(-jnp.abs(x))              # EUP transcendental
    inv = 1.0 / (1.0 + z)                 # single exact divide (keeps 1e-6 tol)
    o_ref[...] = jnp.where(x >= 0.0, inv, z * inv).astype(o_ref.dtype)


# ---------------------------------------------------------------------------
# Wrapper
# ---------------------------------------------------------------------------

def _round_up(a, b):
    return ((a + b - 1) // b) * b


def _sublane_multiple(dtype):
    itemsize = jnp.dtype(dtype).itemsize
    if itemsize >= 4:
        return 8
    if itemsize == 2:
        return 16
    return 32


def pallas_sigmoid(x, *, target_block_bytes=2 * 1024 * 1024, donate_input=False):
    """Elementwise sigmoid over an arbitrarily shaped array via Pallas."""
    orig_shape = x.shape
    dtype = x.dtype
    n = x.size
    if n == 0:
        return x

    itemsize = jnp.dtype(dtype).itemsize
    sub = _sublane_multiple(dtype)

    rows = -(-n // _LANES)                # cdiv(n, 128)
    padded = rows * _LANES

    if padded == n:
        # Fast path: pure reshape (no extra HBM pass).
        x2 = jnp.reshape(x, (rows, _LANES))
        needs_slice = False
    else:
        # Ragged size: pad the tail only up to the next multiple of 128.
        flat = jnp.pad(jnp.ravel(x), (0, padded - n))
        x2 = jnp.reshape(flat, (rows, _LANES))
        needs_slice = True

    # ~2 MiB blocks: above the measured roofline knee, and 4x double-buffered
    # blocks (in + out) = 8 MiB stays inside the v5e 16 MiB scoped-VMEM default.
    max_bm = max(sub, (target_block_bytes // (_LANES * itemsize)) // sub * sub)
    if rows < sub:
        bm = rows                          # full-extent first dim (tiny input)
    elif rows < 2 * sub:
        bm = sub
    else:
        # Cap the block so the "parallel" grid has >= 2 steps (both v7x TCs).
        bm = min(max_bm, _round_up(-(-rows // 2), sub))
    grid = pl.cdiv(rows, bm)               # partial last block handled by Pallas

    call_kwargs = {}
    if donate_input:
        # In-place "Out" semantics when the caller donates x (no extra output alloc).
        call_kwargs["input_output_aliases"] = {0: 0}

    out = pl.pallas_call(
        _sigmoid_kernel,
        grid=(grid,),
        in_specs=[pl.BlockSpec((bm, _LANES), lambda i: (i, 0))],
        out_specs=pl.BlockSpec((bm, _LANES), lambda i: (i, 0)),
        out_shape=jax.ShapeDtypeStruct((rows, _LANES), dtype),
        compiler_params=pltpu.CompilerParams(
            dimension_semantics=("parallel",)),
        **call_kwargs,
    )(x2)

    if needs_slice:
        return out.reshape(-1)[:n].reshape(orig_shape)
    return out.reshape(orig_shape)


# ---------------------------------------------------------------------------
# Module-equivalent forward (in_ch / out_ch are unused, as in the reference)
# ---------------------------------------------------------------------------

def sigmoid_out_forward(x, in_ch=None, out_ch=None):
    return pallas_sigmoid(x)


# ---------------------------------------------------------------------------
# Main
# ---------------------------------------------------------------------------

if __name__ == "__main__":
    key = jax.random.PRNGKey(0)
    k1, k2 = jax.random.split(key)

    # NCHW activation as the DeepLabV3+ head would see it.
    x = jax.random.normal(k1, (2, 4, 16, 16), jnp.float32)
    fwd = jax.jit(sigmoid_out_forward)
    y = fwd(x)
    jax.block_until_ready(y)
    ref = jax.nn.sigmoid(x)
    assert y.shape == x.shape, y.shape
    assert jnp.all(jnp.isfinite(y))
    assert jnp.allclose(y, ref, atol=1e-6, rtol=1e-6), float(jnp.max(jnp.abs(y - ref)))

    # Ragged size (not a multiple of 128) exercises the pad/slice fallback path.
    x_odd = jax.random.normal(k2, (3, 5, 7), jnp.float32) * 4.0
    y_odd = jax.jit(pallas_sigmoid)(x_odd)
    jax.block_until_ready(y_odd)
    ref_odd = jax.nn.sigmoid(x_odd)
    assert y_odd.shape == x_odd.shape
    assert jnp.allclose(y_odd, ref_odd, atol=1e-6, rtol=1e-6)

    # bf16 exercises the dtype-aware (16, 128) sublane tiling.
    x_bf = x.astype(jnp.bfloat16)
    y_bf = jax.jit(pallas_sigmoid)(x_bf)
    jax.block_until_ready(y_bf)
    ref_bf = jax.nn.sigmoid(x_bf)
    assert y_bf.dtype == jnp.bfloat16
    assert jnp.allclose(y_bf.astype(jnp.float32), ref_bf.astype(jnp.float32), atol=1e-2)

    print("KERNEL_OK")
</pallas_src>

<mosaic_0001>
module attributes {stable_mosaic.version = 11 : i64} {
  func.func @_sigmoid_kernel(%arg0: i32, %arg1: memref<8x128xf32, #tpu.memory_space<vmem>>, %arg2: memref<8x128xf32, #tpu.memory_space<vmem>>) attributes {dimension_semantics = [#tpu.dimension_semantics<parallel>], iteration_bounds = array<i64: 2>, scalar_prefetch = 0 : i64, scratch_operands = 0 : i64, tpu.core_type = #tpu.core_type<tc>, window_params = [{transform_indices = @transform_0, window_bounds = array<i64: 8, 128>}, {transform_indices = @transform_1, window_bounds = array<i64: 8, 128>}]} {
    %c0 = arith.constant 0 : index
    %c0_0 = arith.constant 0 : index
    %0 = vector.load %arg1[%c0, %c0_0] : memref<8x128xf32, #tpu.memory_space<vmem>>, vector<8x128xf32>
    %1 = math.absf %0 : vector<8x128xf32>
    %cst = arith.constant 0.000000e+00 : f32
    %2 = vector.broadcast %cst : f32 to vector<8x128xf32>
    %3 = arith.subf %2, %1 : vector<8x128xf32>
    %4 = math.exp %3 : vector<8x128xf32>
    %cst_1 = arith.constant 1.000000e+00 : f32
    %5 = vector.broadcast %cst_1 : f32 to vector<8x128xf32>
    %6 = arith.addf %5, %4 : vector<8x128xf32>
    %cst_2 = arith.constant 1.000000e+00 : f32
    %7 = vector.broadcast %cst_2 : f32 to vector<8x128xf32>
    %8 = arith.divf %7, %6 : vector<8x128xf32>
    %cst_3 = arith.constant 0.000000e+00 : f32
    %9 = vector.broadcast %cst_3 : f32 to vector<8x128xf32>
    %10 = arith.cmpf oge, %0, %9 : vector<8x128xf32>
    %11 = arith.mulf %4, %8 : vector<8x128xf32>
    %12 = arith.select %10, %8, %11 : vector<8x128xi1>, vector<8x128xf32>
    %c0_4 = arith.constant 0 : index
    %c0_5 = arith.constant 0 : index
    %13 = vector.load %arg2[%c0_4, %c0_5] : memref<8x128xf32, #tpu.memory_space<vmem>>, vector<8x128xf32>
    tpu.vector_store %arg2[%c0_4, %c0_5], %12 {strides = array<i32>} : memref<8x128xf32, #tpu.memory_space<vmem>>, vector<8x128xf32>,
    return
  }
  func.func @transform_0(%arg0: i32) -> (i32, i32) {
    %c0_i32 = arith.constant 0 : i32
    %c0_i32_0 = arith.constant 0 : i32
    return %arg0, %c0_i32 : i32, i32
  }
  func.func @transform_1(%arg0: i32) -> (i32, i32) {
    %c0_i32 = arith.constant 0 : i32
    %c0_i32_0 = arith.constant 0 : i32
    return %arg0, %c0_i32 : i32, i32
  }
}

</mosaic_0001>

<bundles_post_ra>
// kernel: sigmoid_out_forward.1
= control target key start
LH: loop header
LB: loop body
LE: loop exit
PB: predicated region body
PF: predicated region fallthrough
CT: control target
= control target key end

     0   :  { %s229_s6 = smov 0   ;;  %s246_s0 = inlined_call_operand.vmem [shape: f32[16,128], index: 0, kind: input, shape index: {}]   ;;  %s247_s1 = inlined_call_operand.vmem [shape: f32[16,128], index: 1, kind: output, shape index: {}]  }
   0x1 LB: > { %s190_s7 = sadd.s32 4294967295, %s217_s6   ;;  %p194_p0 = scmp.ge.s32.totalorder %s217_s6, 1  ;;  %s217_s6 = sphi %s229_s6, %s11_s6  }
   0x2   : > { %p86_p1 = scmp.lt.s32.totalorder %s217_s6, 3 }
   0x4   : > { %p87_p2 = pnand %p194_p0, %p86_p1 }
   0x5   : > { %p104_p3 = scmp.lt.s32.totalorder (!%p87_p2), %s190_s7, 1 }
   0x6   : > { %90 = sbr.rel (%p87_p2) target bundleno = 51 (0x33), region = 24 }
   0xb   : > { %s249_s7 = smov (!%p104_p3, %s190_s7), 1 }
   0xc   : > { %s195_s8 = sshll.u32 %s249_s7, 3 }
   0xd   : > { %s107_s11 = scalar_lea.vmem %s246_s0, %s195_s8  ;;  %s111_s14 = scalar_lea.vmem %s247_s1, %s195_s8 }
   0xe   : > { %v112_v0 = vld [vmem:[%s107_s11] sm:$0xff] }
   0xf   : > { %v113_v1 = vand.u32 2147483647, %v112_v0  ;;  %vm133_vm4 = vcmp.ge.f32.partialorder %v112_v0, 0.0 }
  0x11   : > { %v114_v2 = vsub.f32 0.0, %v113_v1 }
  0x13   : > { %v115_v3 = vmul.f32 1.442695, %v114_v2 }
  0x15   : > { %207 = vpow2.f32 %v115_v3 }
  0x1b   : > { %v208_v4 = vpop.eup %207 }
  0x1c   : > { %v117_v5 = vadd.f32 1.0, %v208_v4 }
  0x1e   : > { %209 = vrcp.f32 %v117_v5  ;;  %v129_v8 = vand.u32 2147483648, %v117_v5  ;;  %vm123_vm0 = vweird.f32 %v117_v5  ;;  %v127_v10 = vand.u32 2147483647, %v117_v5 }
  0x20   : > { %v130_v12 = vor.u32 1.1754944e-38, %v129_v8  ;;  %vm128_vm3 = vcmp.eq.f32.partialorder %v127_v10, 8.507059e+37 }
  0x24   : > { %v210_v6 = vpop.eup %209 }
  0x25   : > { %v119_v7 = vmul.f32 %v210_v6, %v117_v5  ;;  %vm124_vm1 = vweird.f32 %v210_v6 }
  0x26   : > { %vm125_vm2 = vmor %vm123_vm0, %vm124_vm1 }
  0x27   : > { %v120_v9 = vsub.f32 1.0, %v119_v7 }
  0x29   : > { %v121_v11 = vmul.f32 %v210_v6, %v120_v9 }
  0x2b   : > { %v122_v13 = vadd.f32 %v210_v6, %v121_v11 }
  0x2d   : > { %v126_v14 = vsel %vm125_vm2, %v210_v6, %v122_v13 }
  0x2e   : > { %v131_v15 = vsel %vm128_vm3, %v130_v12, %v126_v14 }
  0x2f   : > { %v134_v16 = vmul.f32 %v208_v4, %v131_v15 }
  0x31   : > { %v135_v17 = vsel %vm133_vm4, %v131_v15, %v134_v16 }
  0x32   : > { %136 = vst [vmem:[%s111_s14] sm:$0xff] %v135_v17 }
  0x33 PF: > { %s11_s6 = sadd.s32 1, %s217_s6  }
  0x34   : > { %p8_p4 = scmp.ge.s32.totalorder %s11_s6, 4  }
  0x36   :  { %10 = sbr.rel (!%p8_p4) target bundleno = 1 (0x1), region = 54 }

</bundles_post_ra>
